<compile_context>
chip_gen: v6e
topology: v6e:2x2x1
jax: 0.10.0
libtpu: 0.0.40
codegen_flags: <defaults>
</compile_context>

<pallas_src>
import jax
import jax.numpy as jnp
from jax import lax
from jax.experimental import pallas as pl
from jax.experimental.pallas import tpu as pltpu

NBINS = 17  # bins for clamp(i - j, -8, 8) -> [-8 .. 8]


def _round_up(x, m):
    return -(-x // m) * m


def _vmem_capacity_bytes():
    """Physical VMEM per TensorCore (v5e/v6e: 128 MiB, v7x: 64 MiB)."""
    try:
        return int(pltpu.get_tpu_info().vmem_capacity_bytes)
    except Exception:
        return 64 << 20  # conservative fallback (v7x per-core)


def _pick_col_pack(dim):
    """Smallest cb in [1, 8] with (cb*dim) % 128 == 0 (lane-dense stores)."""
    for cb in range(1, 9):
        if (cb * dim) % 128 == 0:
            return cb
    return 1  # fallback: narrower (masked) lane stores, still correct


def _pick_row_tile(L, step, row_bytes, max_block_bytes):
    """Row-block size: multiple of step=8*cb (keeps the per-row phase/shift
    static and window starts 8-aligned), at least 2 blocks, preferring an even
    block count (v7x's 2 TensorCores), sized against the VMEM budget."""
    if L <= step:
        return L  # single block; i0 == 0, so no alignment constraint on ti
    cap = max(step, (max_block_bytes // max(row_bytes, 1)) // step * step)
    cap = min(cap, ((L - 1) // step) * step)  # force >= 2 row blocks
    cap = max(cap, step)
    floor_t = max(step, (cap // 2) // step * step)
    t = cap
    while t >= floor_t:  # don't sacrifice more than 2x block size for evenness
        if (-(-L // t)) % 2 == 0:
            return t
        t -= step
    return cap


def _make_relpos_kernel(*, cb, ti, cp, k_off):
    """Row-block kernel: each output row is an aligned sublane window copy of a
    statically selected (phase, shift) table.

    tab_ref: (cb*8, s_rows, cb*dim) resident tables; out_ref: (ti, cp, cb*dim).
    """
    step = 8 * cb
    n_rho = min(ti, step)            # static (phase, shift) residues of the rows
    n_chunks = -(-cp // 8)           # <= 8 vregs live per chunk copy

    def kernel(tab_ref, out_ref):
        # i0 // cb for this row block; multiple of 8 whenever the grid has more
        # than one block (then ti % (8*cb) == 0), and 0 for a single block.
        base = pl.program_id(0) * (ti // cb)

        for rho in range(n_rho):                     # static residue loop
            a = k_off - rho                          # = K - i (static part)
            phase = a % cb                           # static
            q_s = a // cb                            # static
            sigma = q_s % 8                          # static sublane shift
            t_idx = phase * 8 + sigma                # static table select
            q0 = q_s - sigma                         # static, multiple of 8
            n_u = len(range(rho, ti, step))          # rows with this residue

            def copy_row(u, carry, *, _q0=q0, _t=t_idx, _rho=rho):
                row = _rho + step * u
                start = _q0 - base - 8 * u           # multiple of 8 by construction
                for ch in range(n_chunks):           # chunked: bounded live range
                    s0 = 8 * ch
                    clen = min(8, cp - s0)
                    beg = pl.multiple_of(start + s0, 8)
                    out_ref[row, pl.ds(s0, clen), :] = tab_ref[_t, pl.ds(beg, clen), :]
                return carry

            if n_u == 1:
                copy_row(0, 0)                       # fully static small case
            else:
                lax.fori_loop(0, n_u, copy_row, 0)   # bounds live ranges per row

    return kernel


def relative_positional_encoding(src, weight, bias, *, out_dtype=jnp.float32):
    """src: (B, L, D) (values unused); weight: (dim, 17); bias: (dim,).

    Returns the (L, L, dim) relative positional encoding.
    """
    L = int(src.shape[1])
    dim = int(weight.shape[0])
    bytesz = jnp.dtype(out_dtype).itemsize

    # Bias fold: Linear(onehot(d)) == (W^T + b)[d] exactly (one-hot rows sum to 1).
    # TODO(synk): for an even larger win, fuse this lookup into the consuming
    # pairwise-feature kernel (or emit bf16 via out_dtype) instead of
    # materializing (L, L, dim) f32 in HBM.
    table = (jnp.asarray(weight, jnp.float32).T
             + jnp.asarray(bias, jnp.float32)[None, :]).astype(out_dtype)

    cb = _pick_col_pack(dim)         # columns packed per sublane row
    width = cb * dim                 # lane width of every block
    step = 8 * cb                    # row period of the static (phase, shift) pattern
    cp = -(-L // cb)                 # packed column blocks (padded iff L % cb != 0)
    lc = cp * cb
    n_tabs = cb * 8
    row_bytes = cp * width * bytesz

    # --- VMEM budgeting (v7x: 64 MiB/TC; v5e/v6e: 128 MiB) --------------------
    vmem_cap = _vmem_capacity_bytes()
    vmem_limit = min((vmem_cap * 3) // 4, 96 << 20)
    s_rows_ub = _round_up((2 * L + 8 * cb) // cb + cp + 9, 8)  # bound with ti <= L
    table_bytes_ub = n_tabs * s_rows_ub * width * bytesz
    # 2x: both the output block and the tables are double-buffered by the
    # pipeline (the constant-index table block is only DMA'd once, but still
    # costs two buffers of VMEM; budget for it explicitly).
    block_budget = (vmem_limit - 2 * table_bytes_ub - (4 << 20)) // 2
    block_budget = max(2 << 20, min(block_budget, 24 << 20))

    ti = _pick_row_tile(L, step, row_bytes, block_budget)
    nb = -(-L // ti)                 # cdiv grid: ti need not divide L

    # --- window ("Toeplitz") tables -------------------------------------------
    # cvec[m] = table[clip(K - m, -8, 8) + 8];  out[i, j] = cvec[(K - i) + j].
    K = L + ti + 8 * cb              # keeps every aligned window start >= 0
    s_rows = _round_up(K // cb + cp + 1, 8)
    t_rows = s_rows + 7
    cvec_len = cb * (t_rows + 2)
    m = jnp.arange(cvec_len)
    cvec = table[jnp.clip(K - m, -8, 8) + 8]                    # (~2L, dim), tiny
    # Phase tables T_phi[s] = concat(cvec[cb*s+phi : cb*s+phi+cb]) and their 8
    # sublane-shifted copies S[phi*8+sig][s] = T_phi[s+sig]: every in-kernel
    # load then starts at a multiple-of-8 sublane (no retiling / rotates).
    tabs = []
    for phi in range(cb):
        tphi = cvec[phi:phi + cb * t_rows].reshape(t_rows, width)
        for sig in range(8):
            tabs.append(tphi[sig:sig + s_rows])
    tab_stack = jnp.stack(tabs, axis=0)                         # (cb*8, s_rows, width)

    kernel = _make_relpos_kernel(cb=cb, ti=ti, cp=cp, k_off=K)

    out = pl.pallas_call(
        kernel,
        out_shape=jax.ShapeDtypeStruct((L, cp, width), out_dtype),
        grid_spec=pltpu.PrefetchScalarGridSpec(
            num_scalar_prefetch=0,
            grid=(nb,),
            in_specs=[pl.BlockSpec((n_tabs, s_rows, width), lambda i: (0, 0, 0))],
            out_specs=pl.BlockSpec((ti, cp, width), lambda i: (i, 0, 0)),
        ),
        compiler_params=pltpu.CompilerParams(
            dimension_semantics=("parallel",),
            vmem_limit_bytes=int(vmem_limit),
        ),
        cost_estimate=pl.CostEstimate(
            flops=0,
            transcendentals=0,
            bytes_accessed=int((L * cp * width + n_tabs * s_rows * width) * bytesz),
        ),
    )(tab_stack)

    out = out.reshape(L, lc, dim)    # metadata-only (row-major) unpack
    if lc != L:                      # only when L % cb != 0 (e.g. odd L, dim=64)
        out = out[:, :L, :]
    return out


def _reference(src, weight, bias):
    L = src.shape[1]
    res_id = jnp.arange(L)[None, :]
    bin_values = jnp.arange(-8, 9)
    d = res_id[:, :, None] - res_id[:, None, :]
    d = jnp.clip(d, -8, 8)
    d_onehot = (d[..., None] == bin_values).astype(jnp.float32)
    p = jnp.einsum("blmk,dk->blmd", d_onehot, weight,
                   precision=jax.lax.Precision.HIGHEST) + bias
    return p[0]


if __name__ == "__main__":
    key = jax.random.PRNGKey(0)
    k_src, k_w, k_b = jax.random.split(key, 3)

    B, L, D = 2, 8, 32     # src feature dim D is ignored by the module
    dim = 64

    src = jax.random.normal(k_src, (B, L, D), dtype=jnp.float32)
    # deterministic nn.Linear(17, dim)-shaped parameters
    weight = jax.random.normal(k_w, (dim, NBINS), dtype=jnp.float32) * (1.0 / NBINS**0.5)
    bias = jax.random.normal(k_b, (dim,), dtype=jnp.float32) * 0.1

    out = relative_positional_encoding(src, weight, bias)
    out = jax.block_until_ready(out)

    ref = _reference(src, weight, bias)
    assert out.shape == (L, L, dim)
    assert jnp.allclose(out, ref, atol=1e-5, rtol=1e-5)

    # Extra coverage for the paths the review flagged:
    #   L=13: odd L -> column padding + external slice, single row block.
    #   L=40: multi-block cdiv grid, fori row loop, aligned window starts.
    for L2 in (13, 40):
        src2 = jax.random.normal(k_src, (1, L2, D), dtype=jnp.float32)
        out2 = jax.block_until_ready(relative_positional_encoding(src2, weight, bias))
        ref2 = _reference(src2, weight, bias)
        assert out2.shape == (L2, L2, dim)
        assert jnp.allclose(out2, ref2, atol=1e-5, rtol=1e-5)

    print("KERNEL_OK")
</pallas_src>

<mosaic_0001>
module attributes {stable_mosaic.version = 11 : i64} {
  func.func @kernel(%arg0: i32, %arg1: memref<16x24x128xf32, #tpu.memory_space<vmem>>, %arg2: memref<8x4x128xf32, #tpu.memory_space<vmem>>) attributes {dimension_semantics = [#tpu.dimension_semantics<parallel>], iteration_bounds = array<i64: 1>, scalar_prefetch = 0 : i64, scratch_operands = 0 : i64, tpu.core_type = #tpu.core_type<tc>, window_params = [{pipeline_mode = #tpu.pipeline_mode<synchronous>, transform_indices = @transform_0, window_bounds = array<i64: 16, 24, 128>}, {transform_indices = @transform_1, window_bounds = array<i64: 8, 4, 128>}]} {
    %c4_i32 = arith.constant 4 : i32
    %0 = arith.muli %arg0, %c4_i32 : i32
    %c16_i32 = arith.constant 16 : i32
    %1 = arith.subi %c16_i32, %0 : i32
    %c0_i32 = arith.constant 0 : i32
    %2 = arith.subi %1, %c0_i32 : i32
    %c0_i32_0 = arith.constant 0 : i32
    %3 = arith.addi %2, %c0_i32_0 : i32
    %4 = tpu.assume_multiple %3, 8 : i32
    %c0 = arith.constant 0 : index
    %5 = arith.index_cast %4 : i32 to index
    %c0_1 = arith.constant 0 : index
    %6 = vector.load %arg1[%c0, %5, %c0_1] : memref<16x24x128xf32, #tpu.memory_space<vmem>>, vector<1x4x128xf32>
    %7 = vector.shape_cast %6 : vector<1x4x128xf32> to vector<4x128xf32>
    %c0_2 = arith.constant 0 : index
    %c0_3 = arith.constant 0 : index
    %c0_4 = arith.constant 0 : index
    %8 = vector.load %arg2[%c0_2, %c0_3, %c0_4] : memref<8x4x128xf32, #tpu.memory_space<vmem>>, vector<1x4x128xf32>
    %9 = vector.shape_cast %8 : vector<1x4x128xf32> to vector<4x128xf32>
    %10 = vector.shape_cast %7 : vector<4x128xf32> to vector<1x4x128xf32>
    tpu.vector_store %arg2[%c0_2, %c0_3, %c0_4], %10 {strides = array<i32>} : memref<8x4x128xf32, #tpu.memory_space<vmem>>, vector<1x4x128xf32>,
    %c8_i32 = arith.constant 8 : i32
    %11 = arith.subi %c8_i32, %0 : i32
    %c0_i32_5 = arith.constant 0 : i32
    %12 = arith.subi %11, %c0_i32_5 : i32
    %c0_i32_6 = arith.constant 0 : i32
    %13 = arith.addi %12, %c0_i32_6 : i32
    %14 = tpu.assume_multiple %13, 8 : i32
    %c15 = arith.constant 15 : index
    %15 = arith.index_cast %14 : i32 to index
    %c0_7 = arith.constant 0 : index
    %16 = vector.load %arg1[%c15, %15, %c0_7] : memref<16x24x128xf32, #tpu.memory_space<vmem>>, vector<1x4x128xf32>
    %17 = vector.shape_cast %16 : vector<1x4x128xf32> to vector<4x128xf32>
    %c1 = arith.constant 1 : index
    %c0_8 = arith.constant 0 : index
    %c0_9 = arith.constant 0 : index
    %18 = vector.load %arg2[%c1, %c0_8, %c0_9] : memref<8x4x128xf32, #tpu.memory_space<vmem>>, vector<1x4x128xf32>
    %19 = vector.shape_cast %18 : vector<1x4x128xf32> to vector<4x128xf32>
    %20 = vector.shape_cast %17 : vector<4x128xf32> to vector<1x4x128xf32>
    tpu.vector_store %arg2[%c1, %c0_8, %c0_9], %20 {strides = array<i32>} : memref<8x4x128xf32, #tpu.memory_space<vmem>>, vector<1x4x128xf32>,
    %c8_i32_10 = arith.constant 8 : i32
    %21 = arith.subi %c8_i32_10, %0 : i32
    %c0_i32_11 = arith.constant 0 : i32
    %22 = arith.subi %21, %c0_i32_11 : i32
    %c0_i32_12 = arith.constant 0 : i32
    %23 = arith.addi %22, %c0_i32_12 : i32
    %24 = tpu.assume_multiple %23, 8 : i32
    %c7 = arith.constant 7 : index
    %25 = arith.index_cast %24 : i32 to index
    %c0_13 = arith.constant 0 : index
    %26 = vector.load %arg1[%c7, %25, %c0_13] : memref<16x24x128xf32, #tpu.memory_space<vmem>>, vector<1x4x128xf32>
    %27 = vector.shape_cast %26 : vector<1x4x128xf32> to vector<4x128xf32>
    %c2 = arith.constant 2 : index
    %c0_14 = arith.constant 0 : index
    %c0_15 = arith.constant 0 : index
    %28 = vector.load %arg2[%c2, %c0_14, %c0_15] : memref<8x4x128xf32, #tpu.memory_space<vmem>>, vector<1x4x128xf32>
    %29 = vector.shape_cast %28 : vector<1x4x128xf32> to vector<4x128xf32>
    %30 = vector.shape_cast %27 : vector<4x128xf32> to vector<1x4x128xf32>
    tpu.vector_store %arg2[%c2, %c0_14, %c0_15], %30 {strides = array<i32>} : memref<8x4x128xf32, #tpu.memory_space<vmem>>, vector<1x4x128xf32>,
    %c8_i32_16 = arith.constant 8 : i32
    %31 = arith.subi %c8_i32_16, %0 : i32
    %c0_i32_17 = arith.constant 0 : i32
    %32 = arith.subi %31, %c0_i32_17 : i32
    %c0_i32_18 = arith.constant 0 : i32
    %33 = arith.addi %32, %c0_i32_18 : i32
    %34 = tpu.assume_multiple %33, 8 : i32
    %c14 = arith.constant 14 : index
    %35 = arith.index_cast %34 : i32 to index
    %c0_19 = arith.constant 0 : index
    %36 = vector.load %arg1[%c14, %35, %c0_19] : memref<16x24x128xf32, #tpu.memory_space<vmem>>, vector<1x4x128xf32>
    %37 = vector.shape_cast %36 : vector<1x4x128xf32> to vector<4x128xf32>
    %c3 = arith.constant 3 : index
    %c0_20 = arith.constant 0 : index
    %c0_21 = arith.constant 0 : index
    %38 = vector.load %arg2[%c3, %c0_20, %c0_21] : memref<8x4x128xf32, #tpu.memory_space<vmem>>, vector<1x4x128xf32>
    %39 = vector.shape_cast %38 : vector<1x4x128xf32> to vector<4x128xf32>
    %40 = vector.shape_cast %37 : vector<4x128xf32> to vector<1x4x128xf32>
    tpu.vector_store %arg2[%c3, %c0_20, %c0_21], %40 {strides = array<i32>} : memref<8x4x128xf32, #tpu.memory_space<vmem>>, vector<1x4x128xf32>,
    %c8_i32_22 = arith.constant 8 : i32
    %41 = arith.subi %c8_i32_22, %0 : i32
    %c0_i32_23 = arith.constant 0 : i32
    %42 = arith.subi %41, %c0_i32_23 : i32
    %c0_i32_24 = arith.constant 0 : i32
    %43 = arith.addi %42, %c0_i32_24 : i32
    %44 = tpu.assume_multiple %43, 8 : i32
    %c6 = arith.constant 6 : index
    %45 = arith.index_cast %44 : i32 to index
    %c0_25 = arith.constant 0 : index
    %46 = vector.load %arg1[%c6, %45, %c0_25] : memref<16x24x128xf32, #tpu.memory_space<vmem>>, vector<1x4x128xf32>
    %47 = vector.shape_cast %46 : vector<1x4x128xf32> to vector<4x128xf32>
    %c4 = arith.constant 4 : index
    %c0_26 = arith.constant 0 : index
    %c0_27 = arith.constant 0 : index
    %48 = vector.load %arg2[%c4, %c0_26, %c0_27] : memref<8x4x128xf32, #tpu.memory_space<vmem>>, vector<1x4x128xf32>
    %49 = vector.shape_cast %48 : vector<1x4x128xf32> to vector<4x128xf32>
    %50 = vector.shape_cast %47 : vector<4x128xf32> to vector<1x4x128xf32>
    tpu.vector_store %arg2[%c4, %c0_26, %c0_27], %50 {strides = array<i32>} : memref<8x4x128xf32, #tpu.memory_space<vmem>>, vector<1x4x128xf32>,
    %c8_i32_28 = arith.constant 8 : i32
    %51 = arith.subi %c8_i32_28, %0 : i32
    %c0_i32_29 = arith.constant 0 : i32
    %52 = arith.subi %51, %c0_i32_29 : i32
    %c0_i32_30 = arith.constant 0 : i32
    %53 = arith.addi %52, %c0_i32_30 : i32
    %54 = tpu.assume_multiple %53, 8 : i32
    %c13 = arith.constant 13 : index
    %55 = arith.index_cast %54 : i32 to index
    %c0_31 = arith.constant 0 : index
    %56 = vector.load %arg1[%c13, %55, %c0_31] : memref<16x24x128xf32, #tpu.memory_space<vmem>>, vector<1x4x128xf32>
    %57 = vector.shape_cast %56 : vector<1x4x128xf32> to vector<4x128xf32>
    %c5 = arith.constant 5 : index
    %c0_32 = arith.constant 0 : index
    %c0_33 = arith.constant 0 : index
    %58 = vector.load %arg2[%c5, %c0_32, %c0_33] : memref<8x4x128xf32, #tpu.memory_space<vmem>>, vector<1x4x128xf32>
    %59 = vector.shape_cast %58 : vector<1x4x128xf32> to vector<4x128xf32>
    %60 = vector.shape_cast %57 : vector<4x128xf32> to vector<1x4x128xf32>
    tpu.vector_store %arg2[%c5, %c0_32, %c0_33], %60 {strides = array<i32>} : memref<8x4x128xf32, #tpu.memory_space<vmem>>, vector<1x4x128xf32>,
    %c8_i32_34 = arith.constant 8 : i32
    %61 = arith.subi %c8_i32_34, %0 : i32
    %c0_i32_35 = arith.constant 0 : i32
    %62 = arith.subi %61, %c0_i32_35 : i32
    %c0_i32_36 = arith.constant 0 : i32
    %63 = arith.addi %62, %c0_i32_36 : i32
    %64 = tpu.assume_multiple %63, 8 : i32
    %c5_37 = arith.constant 5 : index
    %65 = arith.index_cast %64 : i32 to index
    %c0_38 = arith.constant 0 : index
    %66 = vector.load %arg1[%c5_37, %65, %c0_38] : memref<16x24x128xf32, #tpu.memory_space<vmem>>, vector<1x4x128xf32>
    %67 = vector.shape_cast %66 : vector<1x4x128xf32> to vector<4x128xf32>
    %c6_39 = arith.constant 6 : index
    %c0_40 = arith.constant 0 : index
    %c0_41 = arith.constant 0 : index
    %68 = vector.load %arg2[%c6_39, %c0_40, %c0_41] : memref<8x4x128xf32, #tpu.memory_space<vmem>>, vector<1x4x128xf32>
    %69 = vector.shape_cast %68 : vector<1x4x128xf32> to vector<4x128xf32>
    %70 = vector.shape_cast %67 : vector<4x128xf32> to vector<1x4x128xf32>
    tpu.vector_store %arg2[%c6_39, %c0_40, %c0_41], %70 {strides = array<i32>} : memref<8x4x128xf32, #tpu.memory_space<vmem>>, vector<1x4x128xf32>,
    %c8_i32_42 = arith.constant 8 : i32
    %71 = arith.subi %c8_i32_42, %0 : i32
    %c0_i32_43 = arith.constant 0 : i32
    %72 = arith.subi %71, %c0_i32_43 : i32
    %c0_i32_44 = arith.constant 0 : i32
    %73 = arith.addi %72, %c0_i32_44 : i32
    %74 = tpu.assume_multiple %73, 8 : i32
    %c12 = arith.constant 12 : index
    %75 = arith.index_cast %74 : i32 to index
    %c0_45 = arith.constant 0 : index
    %76 = vector.load %arg1[%c12, %75, %c0_45] : memref<16x24x128xf32, #tpu.memory_space<vmem>>, vector<1x4x128xf32>
    %77 = vector.shape_cast %76 : vector<1x4x128xf32> to vector<4x128xf32>
    %c7_46 = arith.constant 7 : index
    %c0_47 = arith.constant 0 : index
    %c0_48 = arith.constant 0 : index
    %78 = vector.load %arg2[%c7_46, %c0_47, %c0_48] : memref<8x4x128xf32, #tpu.memory_space<vmem>>, vector<1x4x128xf32>
    %79 = vector.shape_cast %78 : vector<1x4x128xf32> to vector<4x128xf32>
    %80 = vector.shape_cast %77 : vector<4x128xf32> to vector<1x4x128xf32>
    tpu.vector_store %arg2[%c7_46, %c0_47, %c0_48], %80 {strides = array<i32>} : memref<8x4x128xf32, #tpu.memory_space<vmem>>, vector<1x4x128xf32>,
    return
  }
  func.func @transform_0(%arg0: i32) -> (i32, i32, i32) {
    %c0_i32 = arith.constant 0 : i32
    %c0_i32_0 = arith.constant 0 : i32
    %c0_i32_1 = arith.constant 0 : i32
    %c0_i32_2 = arith.constant 0 : i32
    return %c0_i32, %c0_i32_0, %c0_i32_1 : i32, i32, i32
  }
  func.func @transform_1(%arg0: i32) -> (i32, i32, i32) {
    %c0_i32 = arith.constant 0 : i32
    %c0_i32_0 = arith.constant 0 : i32
    %c0_i32_1 = arith.constant 0 : i32
    return %arg0, %c0_i32, %c0_i32_0 : i32, i32, i32
  }
}

</mosaic_0001>

<bundles_post_ra>
// kernel: tpu_custom_call.1
= control target key start
LH: loop header
LB: loop body
LE: loop exit
PB: predicated region body
PF: predicated region fallthrough
CT: control target
= control target key end

     0   :  { %6 = vsyncpa [#allocation3], 0  ;;  %s168_s0 = inlined_call_operand.hbm [shape: f32[16,24,128], index: 0, kind: input, shape index: {}]   ;;  %s169_s1 = inlined_call_operand.hbm [shape: f32[8,4,128], index: 1, kind: output, shape index: {}]  }
   0x1   :  { %7 = vsyncpa [#allocation4], 0  ;;  %s146_s6 = smov [#allocation2]  }
   0x2   :  { %s13_s7 = sshll.u32 %s146_s6, 4  ;;  %s14_s7 = int_to_ptr.vmem [resolvable:$true] %s13_s7 }
   0x3   :  { %s110_s8 = scalar_lea.vmem %s14_s7, 6144  ;;  %p115_p1 = scmp.lt.s32.totalorder %s14_s7, %s14_s7 }
   0x4   :  { %p111_p0 = scmp.ne.s32.totalorder %s14_s7, %s110_s8  ;;  %p116_p2 = scmp.lt.s32.totalorder %s110_s8, %s110_s8 }
   0x6   :  { %p117_p3 = por %p116_p2, %p115_p1 }
   0x8   :  { %p118_p4 = pnand %p117_p3, %p111_p0 }
   0xa   :  { %121 = shalt.err (!%p118_p4)
}
   0xb   :  { %s147_s9 = smov 128   ;;  %s148_s10 = smov 8  }
   0xc   :  { %19 = dma.hbm_to_vmem [thread:$0]  %s168_s0, 6144, %s14_s7, [#allocation3], %s147_s9, %s147_s9, %s148_s10  }
   0xd   :  { %142 = dma.done.wait [#allocation3], 6144  }
   0xe   :  { %143 = vsyncadd [#allocation3], 4294961152  ;;  %s149_s13 = smov [#allocation5]   ;;  %v26_v0 = vld [vmem:[#allocation2 + $0x10] sm:$0xf] }
   0xf   :  { %s69_s14 = sshll.u32 %s149_s13, 4  ;;  %v31_v1 = vld [vmem:[#allocation2 + $0x170] sm:$0xf]  ;;  %27 = vst [vmem:[#allocation5] sm:$0xf] %v26_v0  ;;  %s70_s14 = int_to_ptr.vmem [resolvable:$true] %s69_s14 }
  0x10   :  { %v36_v2 = vld [vmem:[#allocation2 + $0xb0] sm:$0xf]  ;;  %33 = vst [vmem:[#allocation5 + $0x4] sm:$0xf] %v31_v1  ;;  %v41_v3 = vld [vmem:[#allocation2 + $0x158] sm:$0xf]  ;;  %p127_p6 = scmp.lt.s32.totalorder %s70_s14, %s70_s14 }
  0x11   :  { %38 = vst [vmem:[#allocation5 + $0x8] sm:$0xf] %v36_v2  ;;  %v46_v4 = vld [vmem:[#allocation2 + $0x98] sm:$0xf]  ;;  %v51_v5 = vld [vmem:[#allocation2 + $0x140] sm:$0xf] }
  0x12   :  { %43 = vst [vmem:[#allocation5 + $0xc] sm:$0xf] %v41_v3  ;;  %48 = vst [vmem:[#allocation5 + $0x10] sm:$0xf] %v46_v4  ;;  %v56_v6 = vld [vmem:[#allocation2 + $0x80] sm:$0xf] }
  0x13   :  { %53 = vst [vmem:[#allocation5 + $0x14] sm:$0xf] %v51_v5  ;;  %v61_v7 = vld [vmem:[#allocation2 + $0x128] sm:$0xf]  ;;  %58 = vst [vmem:[#allocation5 + $0x18] sm:$0xf] %v56_v6 }
  0x14   :  { %63 = vst [vmem:[#allocation5 + $0x1c] sm:$0xf] %v61_v7  ;;  %s122_s0 = scalar_lea.vmem %s70_s14, 512 }
  0x15   :  { %p123_p5 = scmp.ne.s32.totalorder %s70_s14, %s122_s0  ;;  %p128_p7 = scmp.lt.s32.totalorder %s122_s0, %s122_s0 }
  0x17   :  { %p129_p8 = por %p128_p7, %p127_p6 }
  0x19   :  { %p130_p9 = pnand %p129_p8, %p123_p5 }
  0x1b   :  { %133 = shalt.err (!%p130_p9)
}
  0x1c   :  { %s150_s15 = smov 64   ;;  %s151_s16 = smov 4  }
  0x1d   :  { %75 = dma.vmem_to_hbm [thread:$0]  %s70_s14, 512, %s169_s1, [#allocation4], %s150_s15, %s150_s15, %s151_s16  }
  0x1e   :  { %144 = dma.done.wait [#allocation4], 512  }
  0x1f   :  { %145 = vsyncadd [#allocation4], 4294966784 }
  0x20   :  { %79 = vsyncpa [#allocation3], 1 }
  0x21   :  { %80 = vsyncpa [#allocation4], 1 }

</bundles_post_ra>
